<compile_context>
chip_gen: v5e
topology: v5e:2x2
jax: 0.10.0
libtpu: 0.0.40
codegen_flags: <defaults>
</compile_context>

<pallas_src>
import jax
import jax.numpy as jnp
from jax import lax
from jax.experimental import pallas as pl
from jax.experimental.pallas import tpu as pltpu

INPUT_SIZE = 8
HIDDEN_SIZE = 32
NUM_LAYERS = 1
OUTPUT_SIZE = 1
WINDOW_SIZE = 5   # module hardcodes window_size=5
BATCH_SIZE = 1    # module hardcodes batch_size=1 in attention_net

# Packed weight slab layout (sublane-aligned so static slices stay in-tile):
#   rows [0, 8)   : W_ih^T        (input, 4H)   gate order i,f,g,o
#   row  8        : b_ih + b_hh   (1, 4H)
#   rows [9, 16)  : zero padding
#   rows [16, 48) : W_hh^T        (hidden, 4H)
WIH_ROW = 0
BIAS_ROW = INPUT_SIZE                      # 8
WHH_ROW = 16
W_ALL_ROWS = WHH_ROW + HIDDEN_SIZE         # 48

# Packed head slab: rows [0, 32) = W_lin^T (hidden, out), row 32 = b_lin.
HEAD_ROWS = HIDDEN_SIZE + 1                # 33


def lstm_attn_kernel(x_ref, w_ref, head_ref, out_ref, hs_ref):
    """One full module forward per grid step (one sliding window).

    x_ref    : (1, seq, input)        f32
    w_ref    : (48, 4*hidden)         f32   packed W_ih^T / bias / W_hh^T
    head_ref : (33, output)           f32   packed W_lin^T / b_lin
    out_ref  : (1, 1, output)         f32
    hs_ref   : (8, hidden) VMEM scratch for the hidden-state history
    """
    H = HIDDEN_SIZE

    wih = w_ref[WIH_ROW:WIH_ROW + INPUT_SIZE, :]        # (8, 128)
    bias = w_ref[BIAS_ROW:BIAS_ROW + 1, :]              # (1, 128)
    whh = w_ref[WHH_ROW:WHH_ROW + HIDDEN_SIZE, :]       # (32, 128)

    x2d = x_ref[0]                                      # (5, 8)
    # Hoisted input projection + bias: one MXU push for the whole sequence.
    xg = jnp.dot(x2d, wih, preferred_element_type=jnp.float32) + bias  # (5, 128)

    h = jnp.zeros((1, H), jnp.float32)
    c = jnp.zeros((1, H), jnp.float32)

    # seq is tiny (5) and static -> fully unrolled recurrence.
    for t in range(WINDOW_SIZE):
        gates = xg[t:t + 1, :] + jnp.dot(h, whh,
                                         preferred_element_type=jnp.float32)  # (1,128)
        sig = jax.nn.sigmoid(gates)      # one EUP pass over the full gate vreg
        th = jnp.tanh(gates)             # one EUP pass over the full gate vreg
        i_g = sig[:, 0 * H:1 * H]
        f_g = sig[:, 1 * H:2 * H]
        g_g = th[:, 2 * H:3 * H]
        o_g = sig[:, 3 * H:4 * H]
        c = f_g * c + i_g * g_g
        h = o_g * jnp.tanh(c)
        hs_ref[t:t + 1, :] = h           # row t of the (8,32) scratch tile

    hs = hs_ref[0:WINDOW_SIZE, :]        # (5, 32)

    # attention_net: scores[t] = <hs[t], h_final>  -> softmax over seq.
    scores = lax.dot_general(h, hs, (((1,), (1,)), ((), ())),
                             preferred_element_type=jnp.float32)   # (1, 5)
    # |h| < 1 elementwise -> |score| <= HIDDEN_SIZE = 32, exp() cannot overflow
    # in f32, so the max-subtraction is skipped.
    e = jnp.exp(scores)
    attn = e * pl.reciprocal(jnp.sum(e, axis=-1, keepdims=True), approx=True)
    new_h = jnp.dot(attn, hs, preferred_element_type=jnp.float32)  # (1, 32)

    # linear head
    wlin = head_ref[0:HIDDEN_SIZE, :]                              # (32, 1)
    blin = head_ref[HIDDEN_SIZE:HIDDEN_SIZE + 1, :]                # (1, 1)
    out = jnp.dot(new_h, wlin, preferred_element_type=jnp.float32) + blin
    out_ref[...] = out.reshape(1, 1, OUTPUT_SIZE)


def init_params(key):
    """Deterministic synthetic parameters (PyTorch shapes, gate order i,f,g,o),
    packed into two sublane-aligned slabs to minimize DMA count."""
    k1, k2, k3, k4, k5 = jax.random.split(key, 5)
    bound = 1.0 / jnp.sqrt(jnp.float32(HIDDEN_SIZE))
    w_ih = jax.random.uniform(k1, (4 * HIDDEN_SIZE, INPUT_SIZE),
                              minval=-bound, maxval=bound, dtype=jnp.float32)
    w_hh = jax.random.uniform(k2, (4 * HIDDEN_SIZE, HIDDEN_SIZE),
                              minval=-bound, maxval=bound, dtype=jnp.float32)
    b_ih = jax.random.uniform(k3, (4 * HIDDEN_SIZE,),
                              minval=-bound, maxval=bound, dtype=jnp.float32)
    b_hh = jax.random.uniform(k4, (4 * HIDDEN_SIZE,),
                              minval=-bound, maxval=bound, dtype=jnp.float32)
    # nn.Linear with the module's init_weights: uniform(-0.1, 0.1) weight, 0.1 bias
    w_lin = jax.random.uniform(k5, (OUTPUT_SIZE, HIDDEN_SIZE),
                               minval=-0.1, maxval=0.1, dtype=jnp.float32)
    b_lin = jnp.full((OUTPUT_SIZE,), 0.1, jnp.float32)

    w_all = jnp.zeros((W_ALL_ROWS, 4 * HIDDEN_SIZE), jnp.float32)
    w_all = w_all.at[WIH_ROW:WIH_ROW + INPUT_SIZE, :].set(jnp.transpose(w_ih))
    w_all = w_all.at[BIAS_ROW, :].set(b_ih + b_hh)
    w_all = w_all.at[WHH_ROW:WHH_ROW + HIDDEN_SIZE, :].set(jnp.transpose(w_hh))

    head = jnp.zeros((HEAD_ROWS, OUTPUT_SIZE), jnp.float32)
    head = head.at[0:HIDDEN_SIZE, :].set(jnp.transpose(w_lin))
    head = head.at[HIDDEN_SIZE, :].set(b_lin)

    return (w_all, head)


def lstm_forward_windows(xs, params):
    """xs: (num_windows, window_size, input_size) -> (num_windows, 1, output_size).

    Each grid step runs the full LSTM+attention+linear forward for one window.
    Weight slabs use constant index_maps (stay VMEM-resident across the grid);
    the window axis is "parallel" so v7x shards it across its two TensorCores.
    """
    w_all, head = params
    num_w = xs.shape[0]
    return pl.pallas_call(
        lstm_attn_kernel,
        out_shape=jax.ShapeDtypeStruct((num_w, 1, OUTPUT_SIZE), jnp.float32),
        grid=(num_w,),
        in_specs=[
            pl.BlockSpec((1, WINDOW_SIZE, INPUT_SIZE), lambda i: (i, 0, 0)),
            pl.BlockSpec((W_ALL_ROWS, 4 * HIDDEN_SIZE), lambda i: (0, 0)),
            pl.BlockSpec((HEAD_ROWS, OUTPUT_SIZE), lambda i: (0, 0)),
        ],
        out_specs=pl.BlockSpec((1, 1, OUTPUT_SIZE), lambda i: (i, 0, 0)),
        scratch_shapes=[pltpu.VMEM((8, HIDDEN_SIZE), jnp.float32)],
        compiler_params=pltpu.CompilerParams(
            dimension_semantics=("parallel",)),
    )(xs.astype(jnp.float32), w_all, head)


def lstm_forward(x, params):
    """x: (1, window_size, input_size) -> (1, 1, output_size), like the torch module."""
    out = lstm_forward_windows(x.reshape(1, WINDOW_SIZE, INPUT_SIZE), params)
    # torch output: linear(transpose(bmm(...), 0, 1)) -> shape (1, 1, 1)
    return out.reshape(NUM_LAYERS, BATCH_SIZE, OUTPUT_SIZE)


if __name__ == "__main__":
    key = jax.random.PRNGKey(0)
    kx, kp = jax.random.split(key)
    params = init_params(kp)

    # Module-equivalent single window: (1, 5, 8) -> (1, 1, 1)
    x = jax.random.normal(kx, (BATCH_SIZE, WINDOW_SIZE, INPUT_SIZE), jnp.float32)
    out = lstm_forward(x, params)
    jax.block_until_ready(out)
    assert out.shape == (NUM_LAYERS, BATCH_SIZE, OUTPUT_SIZE)

    # Many independent sliding windows in one pallas_call (weights resident,
    # window grid axis parallel -> both TensorCores used on v7x).
    xs = jax.random.normal(kx, (8, WINDOW_SIZE, INPUT_SIZE), jnp.float32)
    outs = lstm_forward_windows(xs, params)
    jax.block_until_ready(outs)
    assert outs.shape == (8, NUM_LAYERS, OUTPUT_SIZE)

    print("KERNEL_OK")
</pallas_src>

<mosaic_0001>
module attributes {stable_mosaic.version = 11 : i64} {
  func.func @lstm_attn_kernel(%arg0: i32, %arg1: memref<1x5x8xf32, #tpu.memory_space<vmem>>, %arg2: memref<48x128xf32, #tpu.memory_space<vmem>>, %arg3: memref<33x1xf32, #tpu.memory_space<vmem>>, %arg4: memref<1x1x1xf32, #tpu.memory_space<vmem>>, %arg5: memref<8x32xf32, #tpu.memory_space<vmem>>) attributes {dimension_semantics = [#tpu.dimension_semantics<parallel>], iteration_bounds = array<i64: 1>, scalar_prefetch = 0 : i64, scratch_operands = 1 : i64, tpu.core_type = #tpu.core_type<tc>, window_params = [{transform_indices = @transform_0, window_bounds = array<i64: 1, 5, 8>}, {pipeline_mode = #tpu.pipeline_mode<synchronous>, transform_indices = @transform_1, window_bounds = array<i64: 48, 128>}, {pipeline_mode = #tpu.pipeline_mode<synchronous>, transform_indices = @transform_2, window_bounds = array<i64: 33, 1>}, {transform_indices = @transform_3, window_bounds = array<i64: 1, 1, 1>}]} {
    %c0 = arith.constant 0 : index
    %c0_0 = arith.constant 0 : index
    %0 = vector.load %arg2[%c0, %c0_0] : memref<48x128xf32, #tpu.memory_space<vmem>>, vector<8x128xf32>
    %c8 = arith.constant 8 : index
    %c0_1 = arith.constant 0 : index
    %1 = vector.load %arg2[%c8, %c0_1] : memref<48x128xf32, #tpu.memory_space<vmem>>, vector<1x128xf32>
    %c16 = arith.constant 16 : index
    %c0_2 = arith.constant 0 : index
    %2 = vector.load %arg2[%c16, %c0_2] : memref<48x128xf32, #tpu.memory_space<vmem>>, vector<32x128xf32>
    %c0_3 = arith.constant 0 : index
    %c0_4 = arith.constant 0 : index
    %c0_5 = arith.constant 0 : index
    %3 = vector.load %arg1[%c0_3, %c0_4, %c0_5] : memref<1x5x8xf32, #tpu.memory_space<vmem>>, vector<1x5x8xf32>
    %4 = vector.shape_cast %3 : vector<1x5x8xf32> to vector<5x8xf32>
    %cst = arith.constant dense<0.000000e+00> : vector<5x128xf32>
    %5 = tpu.matmul %4, %0, %cst {dimension_numbers = #tpu.dot_dimension_numbers<[1], [0], [0], [1], [0, 0, 1, 1], [], []>} : vector<5x8xf32>, vector<8x128xf32>, vector<5x128xf32> -> vector<5x128xf32>
    %6 = vector.broadcast %1 : vector<1x128xf32> to vector<5x128xf32>
    %7 = arith.addf %5, %6 : vector<5x128xf32>
    %cst_6 = arith.constant 0.000000e+00 : f32
    %8 = vector.broadcast %cst_6 : f32 to vector<1x32xf32>
    %cst_7 = arith.constant 0.000000e+00 : f32
    %9 = vector.broadcast %cst_7 : f32 to vector<1x32xf32>
    %10 = vector.extract_strided_slice %7 {offsets = [0, 0], sizes = [1, 128], strides = [1, 1]} : vector<5x128xf32> to vector<1x128xf32>
    %cst_8 = arith.constant dense<0.000000e+00> : vector<1x128xf32>
    %11 = tpu.matmul %8, %2, %cst_8 {dimension_numbers = #tpu.dot_dimension_numbers<[1], [0], [0], [1], [0, 0, 1, 1], [], []>} : vector<1x32xf32>, vector<32x128xf32>, vector<1x128xf32> -> vector<1x128xf32>
    %12 = arith.addf %10, %11 : vector<1x128xf32>
    %13 = arith.negf %12 : vector<1x128xf32>
    %14 = math.exp %13 : vector<1x128xf32>
    %cst_9 = arith.constant 1.000000e+00 : f32
    %15 = vector.broadcast %cst_9 : f32 to vector<1x128xf32>
    %16 = arith.addf %15, %14 : vector<1x128xf32>
    %17 = arith.divf %15, %16 : vector<1x128xf32>
    %18 = math.tanh %12 : vector<1x128xf32>
    %19 = vector.extract_strided_slice %17 {offsets = [0, 0], sizes = [1, 32], strides = [1, 1]} : vector<1x128xf32> to vector<1x32xf32>
    %20 = vector.extract_strided_slice %17 {offsets = [0, 32], sizes = [1, 32], strides = [1, 1]} : vector<1x128xf32> to vector<1x32xf32>
    %21 = vector.extract_strided_slice %18 {offsets = [0, 64], sizes = [1, 32], strides = [1, 1]} : vector<1x128xf32> to vector<1x32xf32>
    %22 = vector.extract_strided_slice %17 {offsets = [0, 96], sizes = [1, 32], strides = [1, 1]} : vector<1x128xf32> to vector<1x32xf32>
    %23 = arith.mulf %20, %9 : vector<1x32xf32>
    %24 = arith.mulf %19, %21 : vector<1x32xf32>
    %25 = arith.addf %23, %24 : vector<1x32xf32>
    %26 = math.tanh %25 : vector<1x32xf32>
    %27 = arith.mulf %22, %26 : vector<1x32xf32>
    %c0_10 = arith.constant 0 : index
    %c0_11 = arith.constant 0 : index
    %28 = vector.load %arg5[%c0_10, %c0_11] : memref<8x32xf32, #tpu.memory_space<vmem>>, vector<1x32xf32>
    tpu.vector_store %arg5[%c0_10, %c0_11], %27 {strides = array<i32>} : memref<8x32xf32, #tpu.memory_space<vmem>>, vector<1x32xf32>,
    %29 = vector.extract_strided_slice %7 {offsets = [1, 0], sizes = [1, 128], strides = [1, 1]} : vector<5x128xf32> to vector<1x128xf32>
    %cst_12 = arith.constant dense<0.000000e+00> : vector<1x128xf32>
    %30 = tpu.matmul %27, %2, %cst_12 {dimension_numbers = #tpu.dot_dimension_numbers<[1], [0], [0], [1], [0, 0, 1, 1], [], []>} : vector<1x32xf32>, vector<32x128xf32>, vector<1x128xf32> -> vector<1x128xf32>
    %31 = arith.addf %29, %30 : vector<1x128xf32>
    %32 = arith.negf %31 : vector<1x128xf32>
    %33 = math.exp %32 : vector<1x128xf32>
    %cst_13 = arith.constant 1.000000e+00 : f32
    %34 = vector.broadcast %cst_13 : f32 to vector<1x128xf32>
    %35 = arith.addf %34, %33 : vector<1x128xf32>
    %36 = arith.divf %34, %35 : vector<1x128xf32>
    %37 = math.tanh %31 : vector<1x128xf32>
    %38 = vector.extract_strided_slice %36 {offsets = [0, 0], sizes = [1, 32], strides = [1, 1]} : vector<1x128xf32> to vector<1x32xf32>
    %39 = vector.extract_strided_slice %36 {offsets = [0, 32], sizes = [1, 32], strides = [1, 1]} : vector<1x128xf32> to vector<1x32xf32>
    %40 = vector.extract_strided_slice %37 {offsets = [0, 64], sizes = [1, 32], strides = [1, 1]} : vector<1x128xf32> to vector<1x32xf32>
    %41 = vector.extract_strided_slice %36 {offsets = [0, 96], sizes = [1, 32], strides = [1, 1]} : vector<1x128xf32> to vector<1x32xf32>
    %42 = arith.mulf %39, %25 : vector<1x32xf32>
    %43 = arith.mulf %38, %40 : vector<1x32xf32>
    %44 = arith.addf %42, %43 : vector<1x32xf32>
    %45 = math.tanh %44 : vector<1x32xf32>
    %46 = arith.mulf %41, %45 : vector<1x32xf32>
    %c1 = arith.constant 1 : index
    %c0_14 = arith.constant 0 : index
    %47 = vector.load %arg5[%c1, %c0_14] : memref<8x32xf32, #tpu.memory_space<vmem>>, vector<1x32xf32>
    tpu.vector_store %arg5[%c1, %c0_14], %46 {strides = array<i32>} : memref<8x32xf32, #tpu.memory_space<vmem>>, vector<1x32xf32>,
    %48 = vector.extract_strided_slice %7 {offsets = [2, 0], sizes = [1, 128], strides = [1, 1]} : vector<5x128xf32> to vector<1x128xf32>
    %cst_15 = arith.constant dense<0.000000e+00> : vector<1x128xf32>
    %49 = tpu.matmul %46, %2, %cst_15 {dimension_numbers = #tpu.dot_dimension_numbers<[1], [0], [0], [1], [0, 0, 1, 1], [], []>} : vector<1x32xf32>, vector<32x128xf32>, vector<1x128xf32> -> vector<1x128xf32>
    %50 = arith.addf %48, %49 : vector<1x128xf32>
    %51 = arith.negf %50 : vector<1x128xf32>
    %52 = math.exp %51 : vector<1x128xf32>
    %cst_16 = arith.constant 1.000000e+00 : f32
    %53 = vector.broadcast %cst_16 : f32 to vector<1x128xf32>
    %54 = arith.addf %53, %52 : vector<1x128xf32>
    %55 = arith.divf %53, %54 : vector<1x128xf32>
    %56 = math.tanh %50 : vector<1x128xf32>
    %57 = vector.extract_strided_slice %55 {offsets = [0, 0], sizes = [1, 32], strides = [1, 1]} : vector<1x128xf32> to vector<1x32xf32>
    %58 = vector.extract_strided_slice %55 {offsets = [0, 32], sizes = [1, 32], strides = [1, 1]} : vector<1x128xf32> to vector<1x32xf32>
    %59 = vector.extract_strided_slice %56 {offsets = [0, 64], sizes = [1, 32], strides = [1, 1]} : vector<1x128xf32> to vector<1x32xf32>
    %60 = vector.extract_strided_slice %55 {offsets = [0, 96], sizes = [1, 32], strides = [1, 1]} : vector<1x128xf32> to vector<1x32xf32>
    %61 = arith.mulf %58, %44 : vector<1x32xf32>
    %62 = arith.mulf %57, %59 : vector<1x32xf32>
    %63 = arith.addf %61, %62 : vector<1x32xf32>
    %64 = math.tanh %63 : vector<1x32xf32>
    %65 = arith.mulf %60, %64 : vector<1x32xf32>
    %c2 = arith.constant 2 : index
    %c0_17 = arith.constant 0 : index
    %66 = vector.load %arg5[%c2, %c0_17] : memref<8x32xf32, #tpu.memory_space<vmem>>, vector<1x32xf32>
    tpu.vector_store %arg5[%c2, %c0_17], %65 {strides = array<i32>} : memref<8x32xf32, #tpu.memory_space<vmem>>, vector<1x32xf32>,
    %67 = vector.extract_strided_slice %7 {offsets = [3, 0], sizes = [1, 128], strides = [1, 1]} : vector<5x128xf32> to vector<1x128xf32>
    %cst_18 = arith.constant dense<0.000000e+00> : vector<1x128xf32>
    %68 = tpu.matmul %65, %2, %cst_18 {dimension_numbers = #tpu.dot_dimension_numbers<[1], [0], [0], [1], [0, 0, 1, 1], [], []>} : vector<1x32xf32>, vector<32x128xf32>, vector<1x128xf32> -> vector<1x128xf32>
    %69 = arith.addf %67, %68 : vector<1x128xf32>
    %70 = arith.negf %69 : vector<1x128xf32>
    %71 = math.exp %70 : vector<1x128xf32>
    %cst_19 = arith.constant 1.000000e+00 : f32
    %72 = vector.broadcast %cst_19 : f32 to vector<1x128xf32>
    %73 = arith.addf %72, %71 : vector<1x128xf32>
    %74 = arith.divf %72, %73 : vector<1x128xf32>
    %75 = math.tanh %69 : vector<1x128xf32>
    %76 = vector.extract_strided_slice %74 {offsets = [0, 0], sizes = [1, 32], strides = [1, 1]} : vector<1x128xf32> to vector<1x32xf32>
    %77 = vector.extract_strided_slice %74 {offsets = [0, 32], sizes = [1, 32], strides = [1, 1]} : vector<1x128xf32> to vector<1x32xf32>
    %78 = vector.extract_strided_slice %75 {offsets = [0, 64], sizes = [1, 32], strides = [1, 1]} : vector<1x128xf32> to vector<1x32xf32>
    %79 = vector.extract_strided_slice %74 {offsets = [0, 96], sizes = [1, 32], strides = [1, 1]} : vector<1x128xf32> to vector<1x32xf32>
    %80 = arith.mulf %77, %63 : vector<1x32xf32>
    %81 = arith.mulf %76, %78 : vector<1x32xf32>
    %82 = arith.addf %80, %81 : vector<1x32xf32>
    %83 = math.tanh %82 : vector<1x32xf32>
    %84 = arith.mulf %79, %83 : vector<1x32xf32>
    %c3 = arith.constant 3 : index
    %c0_20 = arith.constant 0 : index
    %85 = vector.load %arg5[%c3, %c0_20] : memref<8x32xf32, #tpu.memory_space<vmem>>, vector<1x32xf32>
    tpu.vector_store %arg5[%c3, %c0_20], %84 {strides = array<i32>} : memref<8x32xf32, #tpu.memory_space<vmem>>, vector<1x32xf32>,
    %86 = vector.extract_strided_slice %7 {offsets = [4, 0], sizes = [1, 128], strides = [1, 1]} : vector<5x128xf32> to vector<1x128xf32>
    %cst_21 = arith.constant dense<0.000000e+00> : vector<1x128xf32>
    %87 = tpu.matmul %84, %2, %cst_21 {dimension_numbers = #tpu.dot_dimension_numbers<[1], [0], [0], [1], [0, 0, 1, 1], [], []>} : vector<1x32xf32>, vector<32x128xf32>, vector<1x128xf32> -> vector<1x128xf32>
    %88 = arith.addf %86, %87 : vector<1x128xf32>
    %89 = arith.negf %88 : vector<1x128xf32>
    %90 = math.exp %89 : vector<1x128xf32>
    %cst_22 = arith.constant 1.000000e+00 : f32
    %91 = vector.broadcast %cst_22 : f32 to vector<1x128xf32>
    %92 = arith.addf %91, %90 : vector<1x128xf32>
    %93 = arith.divf %91, %92 : vector<1x128xf32>
    %94 = math.tanh %88 : vector<1x128xf32>
    %95 = vector.extract_strided_slice %93 {offsets = [0, 0], sizes = [1, 32], strides = [1, 1]} : vector<1x128xf32> to vector<1x32xf32>
    %96 = vector.extract_strided_slice %93 {offsets = [0, 32], sizes = [1, 32], strides = [1, 1]} : vector<1x128xf32> to vector<1x32xf32>
    %97 = vector.extract_strided_slice %94 {offsets = [0, 64], sizes = [1, 32], strides = [1, 1]} : vector<1x128xf32> to vector<1x32xf32>
    %98 = vector.extract_strided_slice %93 {offsets = [0, 96], sizes = [1, 32], strides = [1, 1]} : vector<1x128xf32> to vector<1x32xf32>
    %99 = arith.mulf %96, %82 : vector<1x32xf32>
    %100 = arith.mulf %95, %97 : vector<1x32xf32>
    %101 = arith.addf %99, %100 : vector<1x32xf32>
    %102 = math.tanh %101 : vector<1x32xf32>
    %103 = arith.mulf %98, %102 : vector<1x32xf32>
    %c4 = arith.constant 4 : index
    %c0_23 = arith.constant 0 : index
    %104 = vector.load %arg5[%c4, %c0_23] : memref<8x32xf32, #tpu.memory_space<vmem>>, vector<1x32xf32>
    tpu.vector_store %arg5[%c4, %c0_23], %103 {strides = array<i32>} : memref<8x32xf32, #tpu.memory_space<vmem>>, vector<1x32xf32>,
    %c0_24 = arith.constant 0 : index
    %c0_25 = arith.constant 0 : index
    %105 = vector.load %arg5[%c0_24, %c0_25] : memref<8x32xf32, #tpu.memory_space<vmem>>, vector<5x32xf32>
    %cst_26 = arith.constant dense<0.000000e+00> : vector<1x5xf32>
    %106 = tpu.matmul %103, %105, %cst_26 {dimension_numbers = #tpu.dot_dimension_numbers<[1], [1], [0], [0], [0, 0, 1, 0], [], []>} : vector<1x32xf32>, vector<5x32xf32>, vector<1x5xf32> -> vector<1x5xf32>
    %107 = math.exp %106 : vector<1x5xf32>
    %cst_27 = arith.constant dense<0.000000e+00> : vector<1xf32>
    %108 = vector.multi_reduction <add>, %107, %cst_27 [1] : vector<1x5xf32> to vector<1xf32>
    %109 = vector.shape_cast %108 : vector<1xf32> to vector<1x1xf32>
    %110 = tpu.reciprocal %109 {approx = true} : vector<1x1xf32> -> vector<1x1xf32>
    %111 = vector.broadcast %110 : vector<1x1xf32> to vector<1x5xf32>
    %112 = arith.mulf %107, %111 : vector<1x5xf32>
    %cst_28 = arith.constant dense<0.000000e+00> : vector<1x32xf32>
    %113 = tpu.matmul %112, %105, %cst_28 {dimension_numbers = #tpu.dot_dimension_numbers<[1], [0], [0], [1], [0, 0, 1, 1], [], []>} : vector<1x5xf32>, vector<5x32xf32>, vector<1x32xf32> -> vector<1x32xf32>
    %c0_29 = arith.constant 0 : index
    %c0_30 = arith.constant 0 : index
    %114 = vector.load %arg3[%c0_29, %c0_30] : memref<33x1xf32, #tpu.memory_space<vmem>>, vector<32x1xf32>
    %c32 = arith.constant 32 : index
    %c0_31 = arith.constant 0 : index
    %115 = vector.load %arg3[%c32, %c0_31] : memref<33x1xf32, #tpu.memory_space<vmem>>, vector<1x1xf32>
    %cst_32 = arith.constant dense<0.000000e+00> : vector<1x1xf32>
    %116 = tpu.matmul %113, %114, %cst_32 {dimension_numbers = #tpu.dot_dimension_numbers<[1], [0], [0], [1], [0, 0, 1, 1], [], []>} : vector<1x32xf32>, vector<32x1xf32>, vector<1x1xf32> -> vector<1x1xf32>
    %117 = arith.addf %116, %115 : vector<1x1xf32>
    %118 = vector.shape_cast %117 : vector<1x1xf32> to vector<1x1x1xf32>
    %c0_33 = arith.constant 0 : index
    %c0_34 = arith.constant 0 : index
    %c0_35 = arith.constant 0 : index
    %119 = vector.load %arg4[%c0_33, %c0_34, %c0_35] : memref<1x1x1xf32, #tpu.memory_space<vmem>>, vector<1x1x1xf32>
    tpu.vector_store %arg4[%c0_33, %c0_34, %c0_35], %118 {strides = array<i32>} : memref<1x1x1xf32, #tpu.memory_space<vmem>>, vector<1x1x1xf32>,
    return
  }
  func.func @transform_0(%arg0: i32) -> (i32, i32, i32) {
    %c0_i32 = arith.constant 0 : i32
    %c0_i32_0 = arith.constant 0 : i32
    %c0_i32_1 = arith.constant 0 : i32
    return %arg0, %c0_i32, %c0_i32_0 : i32, i32, i32
  }
  func.func @transform_1(%arg0: i32) -> (i32, i32) {
    %c0_i32 = arith.constant 0 : i32
    %c0_i32_0 = arith.constant 0 : i32
    %c0_i32_1 = arith.constant 0 : i32
    return %c0_i32, %c0_i32_0 : i32, i32
  }
  func.func @transform_2(%arg0: i32) -> (i32, i32) {
    %c0_i32 = arith.constant 0 : i32
    %c0_i32_0 = arith.constant 0 : i32
    %c0_i32_1 = arith.constant 0 : i32
    return %c0_i32, %c0_i32_0 : i32, i32
  }
  func.func @transform_3(%arg0: i32) -> (i32, i32, i32) {
    %c0_i32 = arith.constant 0 : i32
    %c0_i32_0 = arith.constant 0 : i32
    %c0_i32_1 = arith.constant 0 : i32
    return %arg0, %c0_i32, %c0_i32_0 : i32, i32, i32
  }
}

</mosaic_0001>

<bundles_post_ra>
// kernel: tpu_custom_call.1
= control target key start
LH: loop header
LB: loop body
LE: loop exit
PB: predicated region body
PF: predicated region fallthrough
CT: control target
= control target key end

     0   :  { %vm23_vm0 = vcmask 64512   ;;  %s721_s0 = inlined_call_operand.vmem [shape: f32[1,5,8], index: 0, kind: input, shape index: {}]   ;;  %s722_s1 = inlined_call_operand.vmem [shape: f32[48,128], index: 1, kind: input, shape index: {}]   ;;  %s723_s2 = inlined_call_operand.vmem [shape: f32[33,1], index: 2, kind: input, shape index: {}]   ;;  %s724_s3 = inlined_call_operand.hbm [shape: f32[1,1,1], index: 3, kind: output, shape index: {}]  }
   0x1   :  { %v20_v0 = vld [vmem:[%s722_s1 + $0x28] sm:$0xff]  ;;  %v19_v1 = vld [vmem:[%s722_s1 + $0x20] sm:$0xff]  ;;  %v18_v4 = vld [vmem:[%s722_s1 + $0x18] sm:$0xff] }
   0x2   :  { %v15_v2 = vld [vmem:[%s722_s1] sm:$0xff]  ;;  %63 = vmatpush.msra.mxu1 %v20_v0  ;;  %129 = vmatpush.msra.mxu2 %v20_v0 }
   0x3   :  { %42 = vmatpush.msra.mxu0 %v15_v2  ;;  %v21_v3 = vld [vmem:[%s721_s0] sm:$0x1f] }
   0x4   :  { %522 = vmatmul.msk.f32.vlgmr.msra.gmra.mxu0 %vm23_vm0, %v21_v3 }
   0x5   :  { %8 = vsyncpa [#allocation4], 0  ;;  %64 = vmatpush.msra.mxu1 %v19_v1  ;;  %204 = vmatpush.msra.mxu3 %v20_v0  ;;  %v17_v5 = vld [vmem:[%s722_s1 + $0x10] sm:$0xff]  ;;  %v612_v6 = vmov 0.0   ;;  %v541_v7 = vld [vmem:[%s722_s1 + $0x8] ss:$0 sm:$0xff] }
   0x6   :  { %130 = vmatpush.msra.mxu2 %v19_v1  ;;  %279 = vmatpush.msrb.mxu0 %v20_v0  ;;  %s613_s25 = smov 64   ;;  %s614_s1 = smov 32   ;;  %vm113_vm5 = vcmask 253952   ;;  %vm47_vm6 = vcmask 261120  }
   0x7   :  { %65 = vmatpush.msra.mxu1 %v18_v4  ;;  %205 = vmatpush.msra.mxu3 %v19_v1  ;;  %s615_s9 = smov [#allocation3]   ;;  %s513_s13 = sshll.u32 %s724_s3, 4  ;;  %s514_s13 = int_to_ptr.hbm [resolvable:$true] %s513_s13 }
   0x8   :  { %131 = vmatpush.msra.mxu2 %v18_v4  ;;  %280 = vmatpush.msrb.mxu0 %v19_v1  ;;  %s511_s10 = sshll.u32 %s615_s9, 4  ;;  %s512_s10 = int_to_ptr.vmem [resolvable:$true] %s511_s10 }
   0x9   :  { %66 = vmatpush.msra.mxu1 %v17_v5  ;;  %206 = vmatpush.msra.mxu3 %v18_v4 }
   0xa   :  { %67 = vmatmul.f32.vlgmr.msra.gmra.mxu1 %v612_v6  ;;  %132 = vmatpush.msra.mxu2 %v17_v5 }
   0xb   :  { %207 = vmatpush.msra.mxu3 %v17_v5  ;;  %281 = vmatpush.msrb.mxu0 %v18_v4 }
   0xc   :  { %354 = vmatpush.msrb.mxu1 %v20_v0 }
   0xd   :  { %282 = vmatpush.msrb.mxu0 %v17_v5 }
   0xe   :  { %355 = vmatpush.msrb.mxu1 %v19_v1 }
  0x10   :  { %356 = vmatpush.msrb.mxu1 %v18_v4 }
  0x12   :  { %357 = vmatpush.msrb.mxu1 %v17_v5 }
  0x81   :  { %v44_v8 = vpop.f32.mrf.mxu0 }
  0x82   :  { %v657_v9 = vadd.f32 %v541_v7, %v44_v8 }
  0x87   :  { %v68_v10 = vpop.f32.mrf.mxu1 }
  0x88   :  { %v71_v11 = vadd.f32 %v68_v10, %v657_v9 }
  0x8a   :  { %542 = vtanh.f32 %v71_v11  ;;  %v523_v13 = vmul.f32 -1.442695, %v71_v11 }
  0x8c   :  { %544 = vpow2.f32 %v523_v13 }
  0x90   :  { %v543_v12 = vpop.eup %542 }
  0x91   :  { %94 = vrot.lane.b32.xlu0 %v543_v12, %s613_s25 }
  0x92   :  { %v545_v14 = vpop.eup %544 }
  0x93   :  { %v75_v15 = vadd.f32 1.0, %v545_v14 }
  0x95   :  { %546 = vrcp.f32 %v75_v15  ;;  %v87_v21 = vand.u32 2147483648, %v75_v15  ;;  %vm81_vm2 = vweird.f32 %v75_v15  ;;  %v85_v22 = vand.u32 2147483647, %v75_v15 }
  0x97   :  { %v88_v24 = vor.u32 1.1754944e-38, %v87_v21  ;;  %vm86_vm4 = vcmp.eq.f32.partialorder %v85_v22, 8.507059e+37 }
  0x9b   :  { %v547_v16 = vpop.eup %546 }
  0x9c   :  { %v77_v17 = vmul.f32 %v547_v16, %v75_v15  ;;  %vm82_vm1 = vweird.f32 %v547_v16 }
  0x9d   :  { %vm83_vm3 = vmor %vm81_vm2, %vm82_vm1 }
  0x9e   :  { %v78_v18 = vsub.f32 1.0, %v77_v17 }
  0xa0   :  { %v79_v19 = vmul.f32 %v547_v16, %v78_v18 }
  0xa2   :  { %v80_v20 = vadd.f32 %v547_v16, %v79_v19 }
  0xa4   :  { %v84_v23 = vsel %vm83_vm3, %v547_v16, %v80_v20 }
  0xa5   :  { %v89_v26 = vsel %vm86_vm4, %v88_v24, %v84_v23 }
  0xa6   :  { %v92_v28 = vmul.f32 0.0, %v89_v26 }
 0x103   :  { %v95_v25 = vpop.permute.xlu0 %94 }
 0x104   :  { %v97_v27 = vmul.f32 %v95_v25, %v89_v26 }
 0x106   :  { %99 = vrot.lane.b32.xlu0 %v97_v27, %s614_s1 }
 0x178   :  { %v100_v29 = vpop.permute.xlu0 %99 }
 0x179   :  { %v102_v30 = vadd.f32 %v100_v29, %v92_v28 }
 0x17b   :  { %548 = vtanh.f32 %v102_v30  ;;  %v162_v54 = vrot.slane %v102_v30, 7 }
 0x181   :  { %v549_v31 = vpop.eup %548 }
 0x182   :  { %105 = vrot.lane.b32.xlu1 %v549_v31, %s613_s25 }
 0x1f4   :  { %v106_v32 = vpop.permute.xlu1 %105 }
 0x1f5   :  { %v108_v33 = vmul.f32 %v106_v32, %v89_v26 }
 0x1f7   :  { %110 = vrot.lane.b32.xlu1 %v108_v33, %s614_s1 }
 0x269   :  { %v111_v34 = vpop.permute.xlu1 %110 }
 0x26a   :  { %114 = vst.msk [vmem:[#allocation2] sm:$0x1] %vm113_vm5, %v111_v34  ;;  %524 = vmatmul.msk.f32.vlgmr.msra.gmra.mxu2 %vm47_vm6, %v111_v34 }
 0x2ed   :  { %v134_v35 = vpop.f32.mrf.mxu2 }
 0x2ee   :  { %v138_v36 = vrot.slane %v134_v35, 7 }
 0x2f0   :  { %v140_v37 = vadd.f32 %v138_v36, %v657_v9 }
 0x2f2   :  { %550 = vtanh.f32 %v140_v37  ;;  %v525_v39 = vmul.f32 -1.442695, %v140_v37 }
 0x2f4   :  { %552 = vpow2.f32 %v525_v39 }
 0x2f8   :  { %v551_v38 = vpop.eup %550 }
 0x2f9   :  { %166 = vrot.lane.b32.xlu2 %v551_v38, %s613_s25 }
 0x2fa   :  { %v553_v40 = vpop.eup %552 }
 0x2fb   :  { %v144_v41 = vadd.f32 1.0, %v553_v40 }
 0x2fd   :  { %554 = vrcp.f32 %v144_v41  ;;  %v156_v47 = vand.u32 2147483648, %v144_v41  ;;  %vm150_vm8 = vweird.f32 %v144_v41  ;;  %v154_v48 = vand.u32 2147483647, %v144_v41 }
 0x2ff   :  { %v157_v50 = vor.u32 1.1754944e-38, %v156_v47  ;;  %vm155_vm10 = vcmp.eq.f32.partialorder %v154_v48, 8.507059e+37 }
 0x303   :  { %v555_v42 = vpop.eup %554 }
 0x304   :  { %v146_v43 = vmul.f32 %v555_v42, %v144_v41  ;;  %vm151_vm7 = vweird.f32 %v555_v42 }
 0x305   :  { %vm152_vm9 = vmor %vm150_vm8, %vm151_vm7  ;;  %vm185_vm8 = vcmask 254977  }
 0x306   :  { %v147_v44 = vsub.f32 1.0, %v146_v43 }
 0x308   :  { %v148_v45 = vmul.f32 %v555_v42, %v147_v44 }
 0x30a   :  { %v149_v46 = vadd.f32 %v555_v42, %v148_v45 }
 0x30c   :  { %v153_v49 = vsel %vm152_vm9, %v555_v42, %v149_v46  ;;  %vm260_vm9 = vcmask 256002  }
 0x30d   :  { %v158_v52 = vsel %vm155_vm10, %v157_v50, %v153_v49  ;;  %vm335_vm10 = vcmask 257027  }
 0x30e   :  { %v164_v55 = vmul.f32 %v162_v54, %v158_v52 }
 0x353   :  { %v167_v51 = vpop.permute.xlu2 %166 }
 0x354   :  { %v169_v53 = vmul.f32 %v167_v51, %v158_v52 }
 0x356   :  { %171 = vrot.lane.b32.xlu2 %v169_v53, %s614_s1 }
 0x3b0   :  { %v172_v56 = vpop.permute.xlu2 %171 }
 0x3b1   :  { %v174_v57 = vadd.f32 %v172_v56, %v164_v55 }
 0x3b3   :  { %556 = vtanh.f32 %v174_v57  ;;  %v237_v19 = vrot.slane %v174_v57, 7 }
 0x3b9   :  { %v557_v58 = vpop.eup %556 }
 0x3ba   :  { %177 = vrot.lane.b32.xlu0 %v557_v58, %s613_s25 }
 0x42c   :  { %v178_v59 = vpop.permute.xlu0 %177 }
 0x42d   :  { %v669_v60 = vmul.f32 %v178_v59, %v158_v52 }
 0x42f   :  { %v187_v61 = vrot.slane %v669_v60, 1 }
 0x431   :  { %188 = vrot.lane.b32.xlu1 %v187_v61, %s614_s1 }
 0x4a3   :  { %v189_v62 = vpop.permute.xlu1 %188 }
 0x4a4   :  { %526 = vmatmul.msk.f32.vlgmr.msra.gmra.mxu3 %vm47_vm6, %v189_v62 }
 0x527   :  { %v209_v63 = vpop.f32.mrf.mxu3 }
 0x528   :  { %v213_v0 = vrot.slane %v209_v63, 6 }
 0x52a   :  { %v215_v1 = vadd.f32 %v213_v0, %v657_v9 }
 0x52c   :  { %558 = vtanh.f32 %v215_v1  ;;  %v527_v3 = vmul.f32 -1.442695, %v215_v1 }
 0x52e   :  { %560 = vpow2.f32 %v527_v3 }
 0x532   :  { %v559_v2 = vpop.eup %558 }
 0x533   :  { %241 = vrot.lane.b32.xlu2 %v559_v2, %s613_s25 }
 0x534   :  { %v561_v4 = vpop.eup %560 }
 0x535   :  { %v219_v5 = vadd.f32 1.0, %v561_v4 }
 0x537   :  { %562 = vrcp.f32 %v219_v5  ;;  %v231_v12 = vand.u32 2147483648, %v219_v5  ;;  %vm225_vm12 = vweird.f32 %v219_v5  ;;  %v229_v13 = vand.u32 2147483647, %v219_v5 }
 0x539   :  { %v232_v15 = vor.u32 1.1754944e-38, %v231_v12  ;;  %vm230_vm14 = vcmp.eq.f32.partialorder %v229_v13, 8.507059e+37 }
 0x53d   :  { %v563_v6 = vpop.eup %562 }
 0x53e   :  { %v221_v7 = vmul.f32 %v563_v6, %v219_v5  ;;  %vm226_vm11 = vweird.f32 %v563_v6 }
 0x53f   :  { %vm227_vm13 = vmor %vm225_vm12, %vm226_vm11  ;;  %vm410_vm11 = vcmask 258052   ;;  %vm453_vm12 = vcmask 1044480  }
 0x540   :  { %v222_v8 = vsub.f32 1.0, %v221_v7 }
 0x542   :  { %v223_v10 = vmul.f32 %v563_v6, %v222_v8 }
 0x544   :  { %v224_v11 = vadd.f32 %v563_v6, %v223_v10 }
 0x546   :  { %v228_v14 = vsel %vm227_vm13, %v563_v6, %v224_v11  ;;  %vm443_vm13 = vcmask 32768  }
 0x547   :  { %v233_v17 = vsel %vm230_vm14, %v232_v15, %v228_v14  ;;  %vm449_vm14 = vcmask 39936  }
 0x548   :  { %v239_v20 = vmul.f32 %v237_v19, %v233_v17 }
 0x58d   :  { %v242_v16 = vpop.permute.xlu2 %241 }
 0x58e   :  { %v244_v18 = vmul.f32 %v242_v16, %v233_v17 }
 0x590   :  { %246 = vrot.lane.b32.xlu0 %v244_v18, %s614_s1 }
 0x602   :  { %v247_v21 = vpop.permute.xlu0 %246 }
 0x603   :  { %v249_v22 = vadd.f32 %v247_v21, %v239_v20 }
 0x605   :  { %564 = vtanh.f32 %v249_v22  ;;  %v312_v47 = vrot.slane %v249_v22, 7 }
 0x60b   :  { %v565_v23 = vpop.eup %564 }
 0x60c   :  { %252 = vrot.lane.b32.xlu1 %v565_v23, %s613_s25 }
 0x67e   :  { %v253_v24 = vpop.permute.xlu1 %252 }
 0x67f   :  { %v678_v25 = vmul.f32 %v253_v24, %v233_v17 }
 0x681   :  { %v262_v26 = vrot.slane %v678_v25, 2 }
 0x683   :  { %263 = vrot.lane.b32.xlu2 %v262_v26, %s614_s1 }
 0x6dd   :  { %v264_v27 = vpop.permute.xlu2 %263 }
 0x6de   :  { %528 = vmatmul.msk.f32.vlgmr.msrb.gmra.mxu0 %vm47_vm6, %v264_v27 }
 0x75b   :  { %v284_v28 = vpop.f32.mrf.mxu0 }
 0x75c   :  { %v288_v29 = vrot.slane %v284_v28, 5 }
 0x75e   :  { %v290_v30 = vadd.f32 %v288_v29, %v657_v9  ;;  %v479_v29 = vld [vmem:[%s723_s2 + $0x18] sm:$0xff] }
 0x75f   :  { %496 = vmatpush.msra.mxu0 %v479_v29 }
 0x760   :  { %566 = vtanh.f32 %v290_v30  ;;  %v529_v32 = vmul.f32 -1.442695, %v290_v30  ;;  %v478_v30 = vld [vmem:[%s723_s2 + $0x10] sm:$0xff] }
 0x761   :  { %497 = vmatpush.msra.mxu0 %v478_v30 }
 0x762   :  { %568 = vpow2.f32 %v529_v32 }
 0x766   :  { %v567_v31 = vpop.eup %566 }
 0x767   :  { %316 = vrot.lane.b32.xlu0 %v567_v31, %s613_s25  ;;  %v477_v31 = vld [vmem:[%s723_s2 + $0x8] sm:$0xff] }
 0x768   :  { %v569_v33 = vpop.eup %568  ;;  %498 = vmatpush.msra.mxu0 %v477_v31 }
 0x769   :  { %v294_v34 = vadd.f32 1.0, %v569_v33 }
 0x76b   :  { %570 = vrcp.f32 %v294_v34  ;;  %v306_v40 = vand.u32 2147483648, %v294_v34  ;;  %vm300_vm0 = vweird.f32 %v294_v34  ;;  %v304_v41 = vand.u32 2147483647, %v294_v34 }
 0x76d   :  { %v307_v43 = vor.u32 1.1754944e-38, %v306_v40  ;;  %vm305_vm2 = vcmp.eq.f32.partialorder %v304_v41, 8.507059e+37 }
 0x771   :  { %v571_v35 = vpop.eup %570 }
 0x772   :  { %v296_v36 = vmul.f32 %v571_v35, %v294_v34  ;;  %vm301_vm15 = vweird.f32 %v571_v35 }
 0x773   :  { %vm302_vm1 = vmor %vm300_vm0, %vm301_vm15  ;;  %vm504_vm15 = vcmask 0  }
 0x774   :  { %v297_v37 = vsub.f32 1.0, %v296_v36 }
 0x776   :  { %v298_v38 = vmul.f32 %v571_v35, %v297_v37  ;;  %v480_v37 = vld [vmem:[%s723_s2 + $0x20] sm:$0x1] }
 0x778   :  { %v299_v39 = vadd.f32 %v571_v35, %v298_v38 }
 0x77a   :  { %v303_v42 = vsel %vm302_vm1, %v571_v35, %v299_v39  ;;  %v476_v35 = vld [vmem:[%s723_s2] sm:$0xff] }
 0x77b   :  { %v308_v45 = vsel %vm305_vm2, %v307_v43, %v303_v42  ;;  %499 = vmatpush.msra.mxu0 %v476_v35 }
 0x77c   :  { %v314_v48 = vmul.f32 %v312_v47, %v308_v45 }
 0x7d9   :  { %v317_v44 = vpop.permute.xlu0 %316 }
 0x7da   :  { %v319_v46 = vmul.f32 %v317_v44, %v308_v45 }
 0x7dc   :  { %321 = vrot.lane.b32.xlu1 %v319_v46, %s614_s1 }
 0x84e   :  { %v322_v49 = vpop.permute.xlu1 %321 }
 0x84f   :  { %v324_v50 = vadd.f32 %v322_v49, %v314_v48 }
 0x851   :  { %572 = vtanh.f32 %v324_v50  ;;  %v387_v12 = vrot.slane %v324_v50, 7 }
 0x857   :  { %v573_v51 = vpop.eup %572 }
 0x858   :  { %327 = vrot.lane.b32.xlu2 %v573_v51, %s613_s25 }
 0x8b2   :  { %v328_v52 = vpop.permute.xlu2 %327 }
 0x8b3   :  { %v330_v53 = vmul.f32 %v328_v52, %v308_v45 }
 0x8b5   :  { %v337_v54 = vrot.slane %v330_v53, 3 }
 0x8b7   :  { %338 = vrot.lane.b32.xlu0 %v337_v54, %s614_s1 }
 0x929   :  { %v339_v55 = vpop.permute.xlu0 %338 }
 0x92a   :  { %530 = vmatmul.msk.f32.vlgmr.msrb.gmra.mxu1 %vm47_vm6, %v339_v55 }
 0x9a7   :  { %v359_v56 = vpop.f32.mrf.mxu1 }
 0x9a8   :  { %v363_v57 = vrot.slane %v359_v56, 4 }
 0x9aa   :  { %v365_v58 = vadd.f32 %v363_v57, %v657_v9 }
 0x9ac   :  { %574 = vtanh.f32 %v365_v58  ;;  %v531_v61 = vmul.f32 -1.442695, %v365_v58 }
 0x9ae   :  { %576 = vpow2.f32 %v531_v61 }
 0x9b2   :  { %v575_v59 = vpop.eup %574 }
 0x9b3   :  { %391 = vrot.lane.b32.xlu1 %v575_v59, %s613_s25 }
 0x9b4   :  { %v577_v62 = vpop.eup %576 }
 0x9b5   :  { %v369_v63 = vadd.f32 1.0, %v577_v62 }
 0x9b7   :  { %578 = vrcp.f32 %v369_v63  ;;  %v381_v5 = vand.u32 2147483648, %v369_v63  ;;  %vm375_vm4 = vweird.f32 %v369_v63  ;;  %v379_v9 = vand.u32 2147483647, %v369_v63 }
 0x9b9   :  { %v382_v7 = vor.u32 1.1754944e-38, %v381_v5  ;;  %vm380_vm7 = vcmp.eq.f32.partialorder %v379_v9, 8.507059e+37 }
 0x9bb   :  { %182 = vrot.lane.b32.xlu1 %v669_v60, %s614_s1 }
 0x9bd   :  { %v579_v0 = vpop.eup %578 }
 0x9be   :  { %v371_v1 = vmul.f32 %v579_v0, %v369_v63  ;;  %vm376_vm3 = vweird.f32 %v579_v0 }
 0x9bf   :  { %vm377_vm5 = vmor %vm375_vm4, %vm376_vm3 }
 0x9c0   :  { %v372_v2 = vsub.f32 1.0, %v371_v1 }
 0x9c2   :  { %v373_v3 = vmul.f32 %v579_v0, %v372_v2 }
 0x9c4   :  { %v374_v4 = vadd.f32 %v579_v0, %v373_v3 }
 0x9c6   :  { %v378_v6 = vsel %vm377_vm5, %v579_v0, %v374_v4 }
 0x9c7   :  { %v383_v60 = vsel %vm380_vm7, %v382_v7, %v378_v6 }
 0x9c8   :  { %v389_v13 = vmul.f32 %v387_v12, %v383_v60 }
 0xa25   :  { %v392_v8 = vpop.permute.xlu1 %391 }
 0xa26   :  { %v394_v10 = vmul.f32 %v392_v8, %v383_v60 }
 0xa28   :  { %396 = vrot.lane.b32.xlu2 %v394_v10, %s614_s1 }
 0xa2d   :  { %v183_v11 = vpop.permute.xlu1 %182 }
 0xa2e   :  { %186 = vst.msk [vmem:[#allocation2] sm:$0x2] %vm185_vm8, %v183_v11 }
 0xa30   :  { %257 = vrot.lane.b32.xlu2 %v678_v25, %s614_s1 }
 0xa82   :  { %v397_v14 = vpop.permute.xlu2 %396 }
 0xa83   :  { %v399_v15 = vadd.f32 %v397_v14, %v389_v13 }
 0xa85   :  { %580 = vtanh.f32 %v399_v15 }
 0xa8a   :  { %v258_v16 = vpop.permute.xlu2 %257 }
 0xa8b   :  { %v581_v17 = vpop.eup %580  ;;  %261 = vst.msk [vmem:[#allocation2] sm:$0x4] %vm260_vm9, %v258_v16 }
 0xa8c   :  { %402 = vrot.lane.b32.xlu0 %v581_v17, %s613_s25 }
 0xa94   :  { %332 = vrot.lane.b32.xlu0 %v330_v53, %s614_s1 }
 0xafe   :  { %v403_v18 = vpop.permute.xlu0 %402 }
 0xaff   :  { %v405_v19 = vmul.f32 %v403_v18, %v383_v60 }
 0xb01   :  { %v413_v20 = vrot.slane %v405_v19, 4  ;;  %407 = vrot.lane.b32.xlu1 %v405_v19, %s614_s1 }
 0xb03   :  { %414 = vrot.lane.b32.xlu2 %v413_v20, %s614_s1 }
 0xb06   :  { %v333_v21 = vpop.permute.xlu0 %332 }
 0xb07   :  { %336 = vst.msk [vmem:[#allocation2] sm:$0x8] %vm335_vm10, %v333_v21 }
 0xb5d   :  { %v415_v24 = vpop.permute.xlu2 %414 }
 0xb73   :  { %v408_v22 = vpop.permute.xlu1 %407 }
 0xb74   :  { %411 = vst.msk [vmem:[#allocation2] sm:$0x10] %vm410_vm11, %v408_v22 }
 0xb7b   :  { %v412_v23 = vld [vmem:[#allocation2] sm:$0x1f] }
 0xb7c   :  { %532 = vmatpush.xpose.msk.msrb.mxu2 %vm47_vm6, %v412_v23  ;;  %534 = vmatpush.msk.msrb.mxu3 %vm453_vm12, %v412_v23 }
 0xb7f   :  { %533 = vmatmul.msk.f32.vlgmr.msrb.gmra.mxu2 %vm47_vm6, %v415_v24 }
 0xc02   :  { %v438_v25 = vpop.f32.mrf.mxu2 }
 0xc03   :  { %v441_v26 = vmul.f32 1.442695, %v438_v25 }
 0xc05   :  { %582 = vpow2.f32 %v441_v26 }
 0xc0b   :  { %v583_v27 = vpop.eup %582 }
 0xc0c   :  { %v444_v28 = vsel %vm443_vm13, %v583_v27, 0.0 }
 0xc0d   :  { %445 = vadd.xlane.f32.xlu0 %v444_v28 }
 0xc80   :  { %v446_v32 = vpop.xlane.xlu0 %445 }
 0xc81   :  { %584 = vrcp.f32 %v446_v32 }
 0xc87   :  { %v585_v33 = vpop.eup %584 }
 0xc88   :  { %v448_v34 = vmul.f32 %v585_v33, %v583_v27 }
 0xc8a   :  { %535 = vmatmul.msk.f32.vlgmr.msrb.gmra.mxu3 %vm449_vm14, %v448_v34 }
 0xd0d   :  { %v473_v36 = vpop.f32.mrf.mxu3 }
 0xd0e   :  { %536 = vmatmul.msk.f32.vlgmr.msra.gmra.mxu0 %vm47_vm6, %v473_v36 }
 0xd8b   :  { %v501_v38 = vpop.f32.mrf.mxu0 }
 0xd8c   :  { %v502_v39 = vadd.f32 %v501_v38, %v480_v37 }
 0xd8e   :  { %505 = vst.msk [vmem:[#allocation3] sm:$0x1] %vm504_vm15, %v502_v39 }
 0xd8f   :  { %516 = dma.vmem_to_hbm [thread:$0]  %s512_s10, 16, %s514_s13, [#allocation4]  }
 0xd90   :  { %610 = dma.done.wait [#allocation4], 16  }
 0xd91   :  { %611 = vsyncadd [#allocation4], 4294967280 }
 0xd92   :  { %521 = vsyncpa [#allocation4], 1 }

</bundles_post_ra>
